<compile_context>
chip_gen: v6e
topology: v6e:2x2x1
jax: 0.10.0
libtpu: 0.0.40
codegen_flags: <defaults>
</compile_context>

<pallas_src>
import jax
import jax.numpy as jnp
from jax.experimental import pallas as pl
from jax.experimental.pallas import tpu as pltpu

_BN_EPS = 1e-5
_NEG_BIG = -1e30  # bias for padded class columns -> exp() underflows to 0 in softmax


def _round_up(n, m):
    return ((n + m - 1) // m) * m


def _perceptron_kernel(x_ref, w1_ref, b1_ref, w2_ref, b2_ref, w3_ref, b3_ref, o_ref):
    cdt = w1_ref.dtype  # compute dtype for the MXU (f32 or bf16); accumulate in f32

    x = x_ref[...]

    # ---- Layer 1: (Linear + folded BN) + (Dropout = identity) + ReLU ----
    # TODO(synk): training-mode Dropout omitted (eval identity); would need pltpu.prng_*.
    h = jnp.dot(x, w1_ref[...], preferred_element_type=jnp.float32) + b1_ref[...]
    h = jnp.maximum(h, 0.0)

    # ---- Layer 2: (Linear + folded BN) + (Dropout = identity) + ReLU ----
    h = jnp.dot(h.astype(cdt), w2_ref[...], preferred_element_type=jnp.float32) + b2_ref[...]
    h = jnp.maximum(h, 0.0)

    # ---- Output layer: Linear + softmax(dim=-1) ----
    logits = jnp.dot(h.astype(cdt), w3_ref[...], preferred_element_type=jnp.float32) + b3_ref[...]
    m = jnp.max(logits, axis=-1, keepdims=True)
    e = jnp.exp(logits - m)
    denom = jnp.sum(e, axis=-1, keepdims=True)
    probas = e * pl.reciprocal(denom, approx=True)  # EUP vrcp slot, otherwise idle
    o_ref[...] = probas.astype(o_ref.dtype)


def perceptron_forward(x, params, *, compute_dtype=jnp.bfloat16, block_b=512):
    """x: [B, num_features] float32. Returns softmax probabilities [B, n_classes] (f32)."""
    B, F = x.shape
    H = params["w1"].shape[1]
    C = params["w3"].shape[1]

    # ---- Fold eval-mode BatchNorm into the preceding Linear (in f32) ----
    def fold(w, b, g, be, m, v):
        scale = g * jax.lax.rsqrt(v + _BN_EPS)      # [1, H]
        return w * scale, (b - m) * scale + be      # column-wise scale; folded bias

    w1, b1 = fold(params["w1"], params["b1"], params["g1"], params["be1"],
                  params["m1"], params["v1"])
    w2, b2 = fold(params["w2"], params["b2"], params["g2"], params["be2"],
                  params["m2"], params["v2"])
    w3, b3 = params["w3"], params["b3"]

    # ---- Pad to TPU-native tile widths ----
    Fp = _round_up(F, 128)
    Hp = _round_up(H, 128)
    Cp = _round_up(C, 128)

    sublane = 16 if jnp.dtype(compute_dtype) == jnp.dtype(jnp.bfloat16) else 8
    TB = _round_up(min(block_b, B), sublane)        # batch tile (rows)
    Bp = _round_up(B, TB)                           # padded batch so grid divides evenly

    def pad2(a, r, c, fill=0.0):
        return jnp.pad(a, ((0, r - a.shape[0]), (0, c - a.shape[1])),
                       constant_values=fill)

    xp = pad2(x, Bp, Fp).astype(compute_dtype)
    w1p = pad2(w1, Fp, Hp).astype(compute_dtype)
    w2p = pad2(w2, Hp, Hp).astype(compute_dtype)
    w3p = pad2(w3, Hp, Cp).astype(compute_dtype)
    b1p = pad2(b1, 1, Hp).astype(jnp.float32)
    b2p = pad2(b2, 1, Hp).astype(jnp.float32)
    b3p = pad2(b3, 1, Cp, fill=_NEG_BIG).astype(jnp.float32)  # kill padded classes

    grid = (Bp // TB,)

    def resident(shape):
        # Constant index_map -> same block every grid step -> stays VMEM-resident.
        return pl.BlockSpec(shape, lambda i: (0, 0))

    # ---- VMEM budget: resident weights + double-buffered x/out tiles (+ headroom) ----
    isz = jnp.dtype(compute_dtype).itemsize
    weight_bytes = (Fp * Hp + Hp * Hp + Hp * Cp) * isz + (2 * Hp + Cp) * 4
    tile_bytes = TB * Fp * isz + TB * Cp * 4
    interm_bytes = 4 * TB * Hp * 4                  # f32 intermediates inside the body
    vmem_bytes = 2 * (weight_bytes + tile_bytes) + interm_bytes + (8 << 20)
    vmem_bytes = min(max(vmem_bytes, 16 << 20), 64 << 20)  # cap at v7x physical VMEM

    out = pl.pallas_call(
        _perceptron_kernel,
        out_shape=jax.ShapeDtypeStruct((Bp, Cp), jnp.float32),
        grid=grid,
        in_specs=[
            pl.BlockSpec((TB, Fp), lambda i: (i, 0)),   # x: tiled over batch
            resident((Fp, Hp)), resident((1, Hp)),      # w1', b1'
            resident((Hp, Hp)), resident((1, Hp)),      # w2', b2'
            resident((Hp, Cp)), resident((1, Cp)),      # w3,  b3
        ],
        out_specs=pl.BlockSpec((TB, Cp), lambda i: (i, 0)),
        compiler_params=pltpu.CompilerParams(
            dimension_semantics=("parallel",),          # megacore sharding on v7x
            vmem_limit_bytes=int(vmem_bytes)),
    )(xp, w1p, b1p, w2p, b2p, w3p, b3p)

    return out[:B, :C]


def init_params(key, num_features, hidden_size, n_classes):
    """Deterministic parameter init; Linear weights stored pre-transposed as [in, out]."""
    ks = jax.random.split(key, 6)
    f32 = jnp.float32

    def lin(kw, kb, d_in, d_out):
        w = jax.random.normal(kw, (d_in, d_out), f32) * 0.1
        b = jax.random.normal(kb, (1, d_out), f32) * 0.01
        return w, b

    w1, b1 = lin(ks[0], ks[1], num_features, hidden_size)
    w2, b2 = lin(ks[2], ks[3], hidden_size, hidden_size)
    w3, b3 = lin(ks[4], ks[5], hidden_size, n_classes)

    def bn(n):
        return (jnp.ones((1, n), f32),    # gamma
                jnp.zeros((1, n), f32),   # beta
                jnp.zeros((1, n), f32),   # running_mean
                jnp.ones((1, n), f32))    # running_var

    g1, be1, m1, v1 = bn(hidden_size)
    g2, be2, m2, v2 = bn(hidden_size)

    return dict(w1=w1, b1=b1, g1=g1, be1=be1, m1=m1, v1=v1,
                w2=w2, b2=b2, g2=g2, be2=be2, m2=m2, v2=v2,
                w3=w3, b3=b3)


def reference_forward(x, p):
    """Pure-JAX reference of the same forward pass (eval-mode PyTorch semantics)."""
    h = x @ p["w1"] + p["b1"]
    h = (h - p["m1"]) / jnp.sqrt(p["v1"] + _BN_EPS) * p["g1"] + p["be1"]
    h = jnp.maximum(h, 0.0)
    h = h @ p["w2"] + p["b2"]
    h = (h - p["m2"]) / jnp.sqrt(p["v2"] + _BN_EPS) * p["g2"] + p["be2"]
    h = jnp.maximum(h, 0.0)
    logits = h @ p["w3"] + p["b3"]
    return jax.nn.softmax(logits, axis=-1)


if __name__ == "__main__":
    num_features, hidden_size, n_classes, batch = 16, 32, 4, 64

    key = jax.random.PRNGKey(0)
    k_x, k_p = jax.random.split(key)
    x = jax.random.normal(k_x, (batch, num_features), jnp.float32)
    params = init_params(k_p, num_features, hidden_size, n_classes)

    ref = reference_forward(x, params)

    # f32 compute path (block_b=32 -> grid of 2 batch tiles, exercises pipelining).
    probas_f32 = perceptron_forward(x, params, compute_dtype=jnp.float32, block_b=32)
    probas_f32 = jax.block_until_ready(probas_f32)
    assert probas_f32.shape == (batch, n_classes)
    # Tolerances account for BN-fold reassociation + approx (EUP) reciprocal.
    assert jnp.allclose(jnp.sum(probas_f32, axis=-1), 1.0, atol=5e-3)
    assert jnp.allclose(probas_f32, ref, atol=2e-3, rtol=2e-3)

    # bf16 MXU path with f32 accumulation (default), looser tolerance.
    probas_bf16 = perceptron_forward(x, params, compute_dtype=jnp.bfloat16, block_b=32)
    probas_bf16 = jax.block_until_ready(probas_bf16)
    assert probas_bf16.shape == (batch, n_classes)
    assert jnp.allclose(jnp.sum(probas_bf16, axis=-1), 1.0, atol=2e-2)
    assert jnp.allclose(probas_bf16, ref, atol=2e-2, rtol=2e-2)

    print("KERNEL_OK")
</pallas_src>

<mosaic_0001>
module attributes {stable_mosaic.version = 11 : i64} {
  func.func @_perceptron_kernel(%arg0: i32, %arg1: memref<32x128xf32, #tpu.memory_space<vmem>>, %arg2: memref<128x128xf32, #tpu.memory_space<vmem>>, %arg3: memref<1x128xf32, #tpu.memory_space<vmem>>, %arg4: memref<128x128xf32, #tpu.memory_space<vmem>>, %arg5: memref<1x128xf32, #tpu.memory_space<vmem>>, %arg6: memref<128x128xf32, #tpu.memory_space<vmem>>, %arg7: memref<1x128xf32, #tpu.memory_space<vmem>>, %arg8: memref<32x128xf32, #tpu.memory_space<vmem>>) attributes {dimension_semantics = [#tpu.dimension_semantics<parallel>], iteration_bounds = array<i64: 2>, scalar_prefetch = 0 : i64, scratch_operands = 0 : i64, tpu.core_type = #tpu.core_type<tc>, window_params = [{transform_indices = @transform_0, window_bounds = array<i64: 32, 128>}, {pipeline_mode = #tpu.pipeline_mode<synchronous>, transform_indices = @transform_1, window_bounds = array<i64: 128, 128>}, {pipeline_mode = #tpu.pipeline_mode<synchronous>, transform_indices = @transform_2, window_bounds = array<i64: 1, 128>}, {pipeline_mode = #tpu.pipeline_mode<synchronous>, transform_indices = @transform_3, window_bounds = array<i64: 128, 128>}, {pipeline_mode = #tpu.pipeline_mode<synchronous>, transform_indices = @transform_4, window_bounds = array<i64: 1, 128>}, {pipeline_mode = #tpu.pipeline_mode<synchronous>, transform_indices = @transform_5, window_bounds = array<i64: 128, 128>}, {pipeline_mode = #tpu.pipeline_mode<synchronous>, transform_indices = @transform_6, window_bounds = array<i64: 1, 128>}, {transform_indices = @transform_7, window_bounds = array<i64: 32, 128>}]} {
    %c0 = arith.constant 0 : index
    %c0_0 = arith.constant 0 : index
    %0 = vector.load %arg1[%c0, %c0_0] : memref<32x128xf32, #tpu.memory_space<vmem>>, vector<32x128xf32>
    %c0_1 = arith.constant 0 : index
    %c0_2 = arith.constant 0 : index
    %1 = vector.load %arg2[%c0_1, %c0_2] : memref<128x128xf32, #tpu.memory_space<vmem>>, vector<128x128xf32>
    %cst = arith.constant dense<0.000000e+00> : vector<32x128xf32>
    %2 = tpu.matmul %0, %1, %cst {dimension_numbers = #tpu.dot_dimension_numbers<[1], [0], [0], [1], [0, 0, 1, 1], [], []>} : vector<32x128xf32>, vector<128x128xf32>, vector<32x128xf32> -> vector<32x128xf32>
    %c0_3 = arith.constant 0 : index
    %c0_4 = arith.constant 0 : index
    %3 = vector.load %arg3[%c0_3, %c0_4] : memref<1x128xf32, #tpu.memory_space<vmem>>, vector<1x128xf32>
    %4 = vector.broadcast %3 : vector<1x128xf32> to vector<32x128xf32>
    %5 = arith.addf %2, %4 : vector<32x128xf32>
    %cst_5 = arith.constant 0.000000e+00 : f32
    %6 = vector.broadcast %cst_5 : f32 to vector<32x128xf32>
    %7 = arith.maximumf %5, %6 : vector<32x128xf32>
    %c0_6 = arith.constant 0 : index
    %c0_7 = arith.constant 0 : index
    %8 = vector.load %arg4[%c0_6, %c0_7] : memref<128x128xf32, #tpu.memory_space<vmem>>, vector<128x128xf32>
    %cst_8 = arith.constant dense<0.000000e+00> : vector<32x128xf32>
    %9 = tpu.matmul %7, %8, %cst_8 {dimension_numbers = #tpu.dot_dimension_numbers<[1], [0], [0], [1], [0, 0, 1, 1], [], []>} : vector<32x128xf32>, vector<128x128xf32>, vector<32x128xf32> -> vector<32x128xf32>
    %c0_9 = arith.constant 0 : index
    %c0_10 = arith.constant 0 : index
    %10 = vector.load %arg5[%c0_9, %c0_10] : memref<1x128xf32, #tpu.memory_space<vmem>>, vector<1x128xf32>
    %11 = vector.broadcast %10 : vector<1x128xf32> to vector<32x128xf32>
    %12 = arith.addf %9, %11 : vector<32x128xf32>
    %cst_11 = arith.constant 0.000000e+00 : f32
    %13 = vector.broadcast %cst_11 : f32 to vector<32x128xf32>
    %14 = arith.maximumf %12, %13 : vector<32x128xf32>
    %c0_12 = arith.constant 0 : index
    %c0_13 = arith.constant 0 : index
    %15 = vector.load %arg6[%c0_12, %c0_13] : memref<128x128xf32, #tpu.memory_space<vmem>>, vector<128x128xf32>
    %cst_14 = arith.constant dense<0.000000e+00> : vector<32x128xf32>
    %16 = tpu.matmul %14, %15, %cst_14 {dimension_numbers = #tpu.dot_dimension_numbers<[1], [0], [0], [1], [0, 0, 1, 1], [], []>} : vector<32x128xf32>, vector<128x128xf32>, vector<32x128xf32> -> vector<32x128xf32>
    %c0_15 = arith.constant 0 : index
    %c0_16 = arith.constant 0 : index
    %17 = vector.load %arg7[%c0_15, %c0_16] : memref<1x128xf32, #tpu.memory_space<vmem>>, vector<1x128xf32>
    %18 = vector.broadcast %17 : vector<1x128xf32> to vector<32x128xf32>
    %19 = arith.addf %16, %18 : vector<32x128xf32>
    %cst_17 = arith.constant dense<0xFF800000> : vector<32xf32>
    %20 = vector.multi_reduction <maximumf>, %19, %cst_17 [1] : vector<32x128xf32> to vector<32xf32>
    %21 = vector.shape_cast %20 : vector<32xf32> to vector<32x1xf32>
    %22 = vector.broadcast %21 : vector<32x1xf32> to vector<32x128xf32>
    %23 = arith.subf %19, %22 : vector<32x128xf32>
    %24 = math.exp %23 : vector<32x128xf32>
    %cst_18 = arith.constant dense<0.000000e+00> : vector<32xf32>
    %25 = vector.multi_reduction <add>, %24, %cst_18 [1] : vector<32x128xf32> to vector<32xf32>
    %26 = vector.shape_cast %25 : vector<32xf32> to vector<32x1xf32>
    %27 = tpu.reciprocal %26 {approx = true} : vector<32x1xf32> -> vector<32x1xf32>
    %28 = vector.broadcast %27 : vector<32x1xf32> to vector<32x128xf32>
    %29 = arith.mulf %24, %28 : vector<32x128xf32>
    %c0_19 = arith.constant 0 : index
    %c0_20 = arith.constant 0 : index
    %30 = vector.load %arg8[%c0_19, %c0_20] : memref<32x128xf32, #tpu.memory_space<vmem>>, vector<32x128xf32>
    tpu.vector_store %arg8[%c0_19, %c0_20], %29 {strides = array<i32>} : memref<32x128xf32, #tpu.memory_space<vmem>>, vector<32x128xf32>,
    return
  }
  func.func @transform_0(%arg0: i32) -> (i32, i32) {
    %c0_i32 = arith.constant 0 : i32
    %c0_i32_0 = arith.constant 0 : i32
    return %arg0, %c0_i32 : i32, i32
  }
  func.func @transform_1(%arg0: i32) -> (i32, i32) {
    %c0_i32 = arith.constant 0 : i32
    %c0_i32_0 = arith.constant 0 : i32
    %c0_i32_1 = arith.constant 0 : i32
    return %c0_i32, %c0_i32_0 : i32, i32
  }
  func.func @transform_2(%arg0: i32) -> (i32, i32) {
    %c0_i32 = arith.constant 0 : i32
    %c0_i32_0 = arith.constant 0 : i32
    %c0_i32_1 = arith.constant 0 : i32
    return %c0_i32, %c0_i32_0 : i32, i32
  }
  func.func @transform_3(%arg0: i32) -> (i32, i32) {
    %c0_i32 = arith.constant 0 : i32
    %c0_i32_0 = arith.constant 0 : i32
    %c0_i32_1 = arith.constant 0 : i32
    return %c0_i32, %c0_i32_0 : i32, i32
  }
  func.func @transform_4(%arg0: i32) -> (i32, i32) {
    %c0_i32 = arith.constant 0 : i32
    %c0_i32_0 = arith.constant 0 : i32
    %c0_i32_1 = arith.constant 0 : i32
    return %c0_i32, %c0_i32_0 : i32, i32
  }
  func.func @transform_5(%arg0: i32) -> (i32, i32) {
    %c0_i32 = arith.constant 0 : i32
    %c0_i32_0 = arith.constant 0 : i32
    %c0_i32_1 = arith.constant 0 : i32
    return %c0_i32, %c0_i32_0 : i32, i32
  }
  func.func @transform_6(%arg0: i32) -> (i32, i32) {
    %c0_i32 = arith.constant 0 : i32
    %c0_i32_0 = arith.constant 0 : i32
    %c0_i32_1 = arith.constant 0 : i32
    return %c0_i32, %c0_i32_0 : i32, i32
  }
  func.func @transform_7(%arg0: i32) -> (i32, i32) {
    %c0_i32 = arith.constant 0 : i32
    %c0_i32_0 = arith.constant 0 : i32
    return %arg0, %c0_i32 : i32, i32
  }
}

</mosaic_0001>

<bundles_post_ra>
// kernel: tpu_custom_call.1
= control target key start
LH: loop header
LB: loop body
LE: loop exit
PB: predicated region body
PF: predicated region fallthrough
CT: control target
= control target key end

     0   :  { %s1623_s0 = inlined_call_operand.hbm [shape: f32[64,128], index: 0, kind: input, shape index: {}]   ;;  %s1624_s1 = inlined_call_operand.hbm [shape: f32[128,128], index: 1, kind: input, shape index: {}]   ;;  %s1625_s2 = inlined_call_operand.vmem [shape: f32[1,128], index: 2, kind: input, shape index: {}]   ;;  %s1626_s3 = inlined_call_operand.hbm [shape: f32[128,128], index: 3, kind: input, shape index: {}]   ;;  %s1627_s4 = inlined_call_operand.vmem [shape: f32[1,128], index: 4, kind: input, shape index: {}]   ;;  %s1628_s5 = inlined_call_operand.hbm [shape: f32[128,128], index: 5, kind: input, shape index: {}]   ;;  %s1629_s6 = inlined_call_operand.vmem [shape: f32[1,128], index: 6, kind: input, shape index: {}]   ;;  %s1630_s7 = inlined_call_operand.hbm [shape: f32[64,128], index: 7, kind: output, shape index: {}]  }
   0x1   :  { %1637 = sst [smem:[#allocation15_spill]] %s1624_s1 }
   0x2   :  { %12 = vsyncpa [#allocation3], 0 }
   0x3   :  { %14 = vsyncpa [#allocation3 + $0x1], 0 }
   0x4   :  { %15 = vsyncpa [#allocation6], 0 }
   0x5   :  { %16 = vsyncpa [#allocation9], 0 }
   0x6   :  { %17 = vsyncpa [#allocation4], 0 }
   0x7   :  { %19 = vsyncpa [#allocation4 + $0x1], 0  ;;  %s1392_s24 = smov 0   ;;  %s1394_s25 = smov 0  }
   0x8   :  { %s1396_s26 = smov 0   ;;  %s1398_s27 = smov 0  }
   0x9 LB: > { %s1413_s28 = sadd.s32 4294967295, %s1341_s27   ;;  %s835_s29 = sadd.s32 4294967294, %s1341_s27   ;;  %s1341_s27 = sphi %s1398_s27, %s1659_s27   ;;  %s1337_s26 = sphi %s1396_s26, %s1658_s26   ;;  %s1333_s25 = sphi %s1394_s25, %s1657_s25   ;;  %s1329_s24 = sphi %s1392_s24, %s1656_s24  }
   0xa   : > { %p45_p0 = scmp.ne.s32.totalorder %s1333_s25, %s1329_s24  ;;  %p1631_p1 = scmp.eq.s32.totalorder %s1413_s28, 0 }
   0xb   : > { %p195_p2 = scmp.eq.s32.totalorder %s1413_s28, 1  ;;  %p201_p3 = scmp.eq.s32.totalorder %s835_s29, 1 }
   0xc   : > { %p1422_p4 = por %p1631_p1, %p45_p0  ;;  %p836_p5 = scmp.ge.s32.totalorder %s1341_s27, 1 }
   0xd   : > { %p1427_p6 = por %p201_p3, %p45_p0  ;;  %p208_p7 = scmp.lt.s32.totalorder %s1341_s27, 3 }
   0xe   : > { %s1638_s30 = scalar_select %p1422_p4, 1, 0 }
   0xf   : > { %s1639_s8 = scalar_select %p1427_p6, 1, 0 }
  0x10   : > { %p1432_p8 = pnand %p836_p5, %p208_p7  ;;  %s1343_s10 = smov [#allocation5]  }
  0x11   : > { %s220_s11 = sshll.u32 %s1343_s10, 4  ;;  %s1344_s13 = smov [#allocation7]   ;;  %s221_s11 = int_to_ptr.vmem [resolvable:$true] %s220_s11 }
  0x12   : > { %s1640_s9 = scalar_select %p1432_p8, 1, 0 }
  0x13   : > { %p1082_p9 = pneg %p1432_p8  ;;  %s236_s14 = sshll.u32 %s1344_s13, 4  ;;  %s237_s14 = int_to_ptr.vmem [resolvable:$true] %s236_s14 }
  0x14   : > { %s1345_s15 = smov [#allocation8]   ;;  %s1174_s17 = scalar_lea.vmem %s221_s11, 2048 }
  0x15   : > { %p1441_p11 = pnand %p1082_p9, %p1631_p1  ;;  %s252_s16 = sshll.u32 %s1345_s15, 4  ;;  %s253_s16 = int_to_ptr.vmem [resolvable:$true] %s252_s16 }
  0x16   : > { %p1175_p13 = scmp.ne.s32.totalorder %s221_s11, %s1174_s17  ;;  %p1182_p5 = scmp.lt.s32.totalorder %s221_s11, %s221_s11 }
  0x17   : > { %p1165_p12 = pneg %p1441_p11  ;;  %p1183_p7 = scmp.lt.s32.totalorder %s1174_s17, %s1174_s17 }
  0x19   : > { %p1177_p0 = pnand %p1175_p13, %p1165_p12  ;;  %p1184_p9 = por %p1183_p7, %p1182_p5 }
  0x1b   : > { %p1178_p3 = pneg %p1177_p0 }
  0x1d   : > { %p1185_p10 = pnand %p1184_p9, %p1178_p3 }
  0x1f   : > { %1188 = shalt.err (!%p1185_p10)
}
  0x20   : > { %s1632_s18 = smov 128   ;;  %s1633_s19 = smov 8  }
  0x21   : > { %s1642_s1 = sld [smem:[#allocation15_spill]]  ;;  %s1200_s22 = scalar_lea.vmem %s237_s14, 2048 }
  0x22   : > { %p1201_p13 = scmp.ne.s32.totalorder %s237_s14, %s1200_s22  ;;  %p1208_p3 = scmp.lt.s32.totalorder %s237_s14, %s237_s14 }
  0x23   : > { %p1209_p10 = scmp.lt.s32.totalorder %s1200_s22, %s1200_s22 }
  0x24   : > { %p1203_p0 = pnand %p1201_p13, %p1165_p12 }
  0x25   : > { %p1210_p7 = por %p1209_p10, %p1208_p3 }
  0x26   : > { %p1204_p5 = pneg %p1203_p0 }
  0x27   : > { %1085 = dma.hbm_to_vmem [thread:$0]  (!%p1441_p11), %s1642_s1, 2048, %s221_s11, [#allocation6], %s1632_s18, %s1632_s18, %s1633_s19  }
  0x28   : > { %p1211_p9 = pnand %p1210_p7, %p1204_p5 }
  0x2a   : > { %1214 = shalt.err (!%p1211_p9)
}
  0x2b   : > { %1088 = dma.hbm_to_vmem [thread:$0]  (!%p1441_p11), %s1626_s3, 2048, %s237_s14, [#allocation6], %s1632_s18, %s1632_s18, %s1633_s19  }
  0x2c   : > { %s1226_s10 = scalar_lea.vmem %s253_s16, 2048  ;;  %p1234_p3 = scmp.lt.s32.totalorder %s253_s16, %s253_s16 }
  0x2d   : > { %p1227_p1 = scmp.ne.s32.totalorder %s253_s16, %s1226_s10  ;;  %p1235_p5 = scmp.lt.s32.totalorder %s1226_s10, %s1226_s10 }
  0x2f   : > { %p1229_p13 = pnand %p1227_p1, %p1165_p12  ;;  %p1236_p10 = por %p1235_p5, %p1234_p3 }
  0x31   : > { %p1230_p0 = pneg %p1229_p13 }
  0x33   : > { %p1237_p7 = pnand %p1236_p10, %p1230_p0 }
  0x35   : > { %1240 = shalt.err (!%p1237_p7)
}
  0x36   : > { %1091 = dma.hbm_to_vmem [thread:$0]  (!%p1441_p11), %s1628_s5, 2048, %s253_s16, [#allocation9], %s1632_s18, %s1632_s18, %s1633_s19  }
  0x37   : > { %s1481_s14 = sadd.s32 1, %s1341_s27   ;;  %s32_s15 = sadd.s32 1, %s1337_s26 }
  0x38   : > { %s29_s12 = ssub.s32 %s1341_s27, %s1481_s14  ;;  %p39_p12 = scmp.ne.s32.totalorder %s1337_s26, %s1333_s25 }
  0x39   : > { %p30_p1 = scmp.eq.s32.totalorder %s29_s12, 0  ;;  %p40_p9 = scmp.eq.s32.totalorder %s1341_s27, 0 }
  0x3a   : > { %p1103_p13 = scmp.lt.s32.totalorder %s1341_s27, 2  ;;  %p1495_p3 = por %p195_p2, %p39_p12 }
  0x3b   : > { %s1491_s17 = scalar_select %p30_p1, %s1337_s26, %s32_s15  }
  0x3c   : > { %p41_p0 = por %p40_p9, %p39_p12  ;;  %s269_s21 = sand.u32 1, %s1337_s26  }
  0x3d   : > { %s1643_s20 = scalar_select %p1495_p3, 1, 0 }
  0x3e   : > { %s858_s22 = sshll.u32 %s1341_s27, 9  ;;  %s841_s16 = sshll.u32 %s269_s21, 5 }
  0x3f   : > { %s1504_s10 = scalar_lea.hbm %s1623_s0, %s858_s22  ;;  %s273_s11 = scalar_lea.vmem [#allocation2], %s841_s16 }
  0x40   : > { %s280_s13 = sshll.u32 %s273_s11, 4  ;;  %p1506_p11 = pnand %p1103_p13, %p41_p0  ;;  %s1510_s13 = int_to_ptr.vmem [resolvable:$true] %s280_s13 }
  0x41   : > { %s1512_s15 = scalar_lea.sflag [#allocation3], %s269_s21  ;;  %s1241_s18 = scalar_lea.hbm %s1504_s10, 512 }
  0x42   : > { %p1242_p2 = scmp.ne.s32.totalorder %s1504_s10, %s1241_s18  ;;  %p1243_p5 = pneg %p1506_p11 }
  0x43   : > { %s1246_s16 = scalar_lea.hbm %s1623_s0, 1024  ;;  %p1247_p1 = scmp.lt.s32.totalorder %s1504_s10, %s1623_s0 }
  0x44   : > { %p1244_p10 = pnand %p1243_p5, %p1242_p2  ;;  %p1248_p12 = scmp.lt.s32.totalorder %s1246_s16, %s1241_s18 }
  0x46   : > { %p1245_p7 = pneg %p1244_p10  ;;  %p1249_p9 = por %p1248_p12, %p1247_p1 }
  0x48   : > { %p1250_p13 = pnand %p1249_p9, %p1245_p7 }
  0x4a   : > { %1253 = shalt.err (!%p1250_p13)
}
  0x4b   : > { %s1254_s21 = scalar_lea.vmem %s1510_s13, 512  ;;  %s1348_s19 = smov [#allocation2]  }
  0x4c   : > { %p1255_p0 = scmp.ne.s32.totalorder %s1510_s13, %s1254_s21  ;;  %s1259_s1 = sshll.u32 %s1348_s19, 4  ;;  %s1260_s1 = int_to_ptr.vmem [resolvable:$false] %s1259_s1 }
  0x4d   : > { %s1261_s22 = scalar_lea.vmem %s1260_s1, 1024  ;;  %p1262_p10 = scmp.lt.s32.totalorder %s1510_s13, %s1260_s1 }
  0x4e   : > { %p1257_p6 = pnand %p1255_p0, %p1243_p5  ;;  %p1263_p3 = scmp.lt.s32.totalorder %s1261_s22, %s1254_s21 }
  0x50   : > { %p1258_p2 = pneg %p1257_p6  ;;  %p1264_p4 = por %p1263_p3, %p1262_p10 }
  0x52   : > { %p1265_p8 = pnand %p1264_p4, %p1258_p2 }
  0x54   : > { %1268 = shalt.err (!%p1265_p8)
}
  0x55   : > { %s1645_s18 = smov 8   ;;  %s1646_s23 = smov 128  }
  0x56   : > { %1095 = dma.hbm_to_vmem [thread:$0]  (!%p1506_p11), %s1504_s10, 512, %s1510_s13, %s1512_s15, %s1646_s23, %s1646_s23, %s1645_s18  }
  0x57   : > { %p1647_p6 = scmp.ne.s32.totalorder %s1640_s9, 0 }
  0x58   : > { %s1539_s19 = sand.u32 (!%p1647_p6), 1, %s1333_s25   ;;  %p1648_p4 = scmp.ne.s32.totalorder (!%p1647_p6), %s1638_s30, 0 }
  0x59   : > { %292 = sbr.rel (%p1647_p6) target bundleno = 1065 (0x429), region = 48  ;;  %s845_s1 = sshll.u32 (!%p1647_p6), %s1539_s19, 5 }
  0x5a   : > { %s295_s16 = scalar_lea.sflag (!%p1647_p6), [#allocation3], %s1539_s19  ;;  %s1545_s12 = scalar_lea.vmem (!%p1647_p6), [#allocation2], %s845_s1 }
  0x5e   : > { %1312 = dma.done.wait (%p1648_p4), %s295_s16, 512  }
  0x5f   : > { %1314 = vsyncadd (%p1648_p4), %s295_s16, 4294966784  ;;  %p1649_p8 = scmp.eq.s32.totalorder %s1413_s28, 0 }
  0x61   : > { %1316 = dma.done.wait (%p1649_p8), [#allocation6], 4096   ;;  %p1650_p3 = pmov %p1649_p8 }
  0x63   : > { %1318 = vsyncadd (%p1650_p3), [#allocation6], 4294963200  ;;  %p1651_p11 = pmov %p1650_p3 }
  0x64   : > { %p1652_p5 = pmov %p1650_p3 }
  0x65   : > { %1320 = dma.done.wait (%p1651_p11), [#allocation9], 2048  }
  0x66   : > { %1322 = vsyncadd (%p1652_p5), [#allocation9], 4294965248  ;;  %v362_v0 = vld [vmem:[#allocation5 + $0x78] sm:$0xff]  ;;  %v361_v1 = vld [vmem:[#allocation5 + $0x70] sm:$0xff]  ;;  %s340_s11 = scalar_lea.vmem [#allocation10], %s845_s1  ;;  %s859_s21 = sshll.u32 %s1413_s28, 9 }
  0x67   : > { %920 = vmatprep.subr.mxu0 %v362_v0  ;;  %v360_v2 = vld [vmem:[#allocation5 + $0x68] sm:$0xff]  ;;  %v359_v3 = vld [vmem:[#allocation5 + $0x60] sm:$0xff]  ;;  %v358_v5 = vld [vmem:[#allocation5 + $0x58] sm:$0xff]  ;;  %s733_s22 = sshll.u32 %s340_s11, 4  ;;  %s1578_s16 = scalar_lea.hbm %s1630_s7, %s859_s21  ;;  %s1580_s22 = int_to_ptr.vmem [resolvable:$true] %s733_s22 }
  0x68   : > { %921 = vmatpush3.msra.mxu0 %v362_v0  ;;  %v343_v4 = vld [vmem:[%s1545_s12] sm:$0xff]  ;;  %v474_v6 = vld [vmem:[#allocation7 + $0x78] sm:$0xff]  ;;  %v473_v7 = vld [vmem:[#allocation7 + $0x70] sm:$0xff]  ;;  %s720_s1 = scalar_lea.sflag [#allocation4], %s1539_s19  ;;  %p1653_p1 = scmp.ne.s32.totalorder %s1643_s20, 0 }
  0x69   : > { %922 = vmatprep.subr.mxu0 %v361_v1  ;;  %952 = vmatprep.mubr.f32.mxu0 %v343_v4  ;;  %v357_v8 = vld [vmem:[#allocation5 + $0x50] sm:$0xff]  ;;  %v472_v9 = vld [vmem:[#allocation7 + $0x68] sm:$0xff]  ;;  %v471_v11 = vld [vmem:[#allocation7 + $0x60] sm:$0xff]  ;;  %s1349_s28 = smov [#allocation10]  }
  0x6a   : > { %923 = vmatpush3.msra.mxu0 %v361_v1  ;;  %958 = vmatprep.subr.mxu1 %v474_v6  ;;  %v356_v10 = vld [vmem:[#allocation5 + $0x48] sm:$0xff]  ;;  %v355_v12 = vld [vmem:[#allocation5 + $0x40] sm:$0xff]  ;;  %v470_v13 = vld [vmem:[#allocation7 + $0x58] sm:$0xff]  ;;  %s1273_s30 = sshll.u32 %s1349_s28, 4  ;;  %s1274_s30 = int_to_ptr.vmem [resolvable:$false] %s1273_s30 }
  0x6b   : > { %924 = vmatprep.subr.mxu0 %v360_v2  ;;  %959 = vmatpush3.msra.mxu1 %v474_v6  ;;  %v354_v14 = vld [vmem:[#allocation5 + $0x38] sm:$0xff]  ;;  %v469_v15 = vld [vmem:[#allocation7 + $0x50] sm:$0xff]  ;;  %v468_v17 = vld [vmem:[#allocation7 + $0x48] sm:$0xff]  ;;  %s1275_s9 = scalar_lea.vmem %s1274_s30, 1024  ;;  %p1276_p13 = scmp.lt.s32.totalorder %s1580_s22, %s1274_s30 }
  0x6c   : > { %925 = vmatpush3.msra.mxu0 %v360_v2  ;;  %960 = vmatprep.subr.mxu1 %v473_v7  ;;  %v353_v16 = vld [vmem:[#allocation5 + $0x30] sm:$0xff]  ;;  %v352_v18 = vld [vmem:[#allocation5 + $0x28] sm:$0xff]  ;;  %v467_v19 = vld [vmem:[#allocation7 + $0x40] sm:$0xff] }
  0x6d   : > { %926 = vmatprep.subr.mxu0 %v359_v3  ;;  %961 = vmatpush3.msra.mxu1 %v473_v7  ;;  %v351_v20 = vld [vmem:[#allocation5 + $0x20] sm:$0xff]  ;;  %v466_v21 = vld [vmem:[#allocation7 + $0x38] sm:$0xff]  ;;  %v465_v23 = vld [vmem:[#allocation7 + $0x30] sm:$0xff] }
  0x6e   : > { %927 = vmatpush3.msra.mxu0 %v359_v3  ;;  %962 = vmatprep.subr.mxu1 %v472_v9  ;;  %v350_v22 = vld [vmem:[#allocation5 + $0x18] sm:$0xff]  ;;  %v349_v24 = vld [vmem:[#allocation5 + $0x10] sm:$0xff]  ;;  %v464_v25 = vld [vmem:[#allocation7 + $0x28] sm:$0xff] }
  0x6f   : > { %928 = vmatprep.subr.mxu0 %v358_v5  ;;  %963 = vmatpush3.msra.mxu1 %v472_v9  ;;  %v348_v26 = vld [vmem:[#allocation5 + $0x8] sm:$0xff]  ;;  %v463_v27 = vld [vmem:[#allocation7 + $0x20] sm:$0xff]  ;;  %v345_v30 = vld [vmem:[%s1545_s12 + $0x10] sm:$0xff] }
  0x70   : > { %929 = vmatpush3.msra.mxu0 %v358_v5  ;;  %964 = vmatprep.subr.mxu1 %v471_v11  ;;  %v347_v28 = vld [vmem:[#allocation5] sm:$0xff]  ;;  %v344_v29 = vld [vmem:[%s1545_s12 + $0x8] sm:$0xff]  ;;  %v346_v31 = vld [vmem:[%s1545_s12 + $0x18] sm:$0xff]  ;;  %s1269_s12 = scalar_lea.vmem %s1580_s22, 512 }
  0x71   : > { %930 = vmatprep.subr.mxu0 %v357_v8  ;;  %965 = vmatpush3.msra.mxu1 %v471_v11  ;;  %v462_v32 = vld [vmem:[#allocation7 + $0x18] sm:$0xff]  ;;  %v461_v33 = vld [vmem:[#allocation7 + $0x10] sm:$0xff]  ;;  %v460_v34 = vld [vmem:[#allocation7 + $0x8] sm:$0xff]  ;;  %p1270_p7 = scmp.ne.s32.totalorder %s1580_s22, %s1269_s12  ;;  %p1277_p0 = scmp.lt.s32.totalorder %s1275_s9, %s1269_s12 }
  0x72   : > { %931 = vmatpush3.msra.mxu0 %v357_v8  ;;  %966 = vmatprep.subr.mxu1 %v470_v13  ;;  %v459_v35 = vld [vmem:[#allocation7] sm:$0xff]  ;;  %v586_v36 = vld [vmem:[#allocation8 + $0x78] sm:$0xff]  ;;  %v585_v37 = vld [vmem:[#allocation8 + $0x70] sm:$0xff] }
  0x73   : > { %932 = vmatprep.subr.mxu0 %v356_v10  ;;  %967 = vmatpush3.msra.mxu1 %v470_v13  ;;  %v584_v38 = vld [vmem:[#allocation8 + $0x68] sm:$0xff]  ;;  %v583_v39 = vld [vmem:[#allocation8 + $0x60] sm:$0xff]  ;;  %v582_v40 = vld [vmem:[#allocation8 + $0x58] sm:$0xff]  ;;  %p1271_p12 = pnand %p1270_p7, %p1653_p1  ;;  %p1278_p2 = por %p1277_p0, %p1276_p13 }
  0x74   : > { %933 = vmatpush3.msra.mxu0 %v356_v10  ;;  %968 = vmatprep.subr.mxu1 %v469_v15  ;;  %v581_v41 = vld [vmem:[#allocation8 + $0x50] sm:$0xff]  ;;  %v580_v42 = vld [vmem:[#allocation8 + $0x48] sm:$0xff]  ;;  %v579_v43 = vld [vmem:[#allocation8 + $0x40] sm:$0xff] }
  0x75   : > { %934 = vmatprep.subr.mxu0 %v355_v12  ;;  %969 = vmatpush3.msra.mxu1 %v469_v15  ;;  %v578_v44 = vld [vmem:[#allocation8 + $0x38] sm:$0xff]  ;;  %v577_v45 = vld [vmem:[#allocation8 + $0x30] sm:$0xff]  ;;  %v576_v46 = vld [vmem:[#allocation8 + $0x28] sm:$0xff]  ;;  %p1272_p9 = pneg %p1271_p12 }
  0x76   : > { %935 = vmatpush3.msra.mxu0 %v355_v12  ;;  %970 = vmatprep.subr.mxu1 %v468_v17  ;;  %v575_v47 = vld [vmem:[#allocation8 + $0x20] sm:$0xff]  ;;  %v574_v61 = vld [vmem:[#allocation8 + $0x18] sm:$0xff]  ;;  %v573_v62 = vld [vmem:[#allocation8 + $0x10] sm:$0xff] }
  0x77   : > { %936 = vmatprep.subr.mxu0 %v354_v14  ;;  %971 = vmatpush3.msra.mxu1 %v468_v17  ;;  %v850_v48 = vld [vmem:[%s1625_s2] ss:$0 sm:$0xff]  ;;  %v572_v63 = vld [vmem:[#allocation8 + $0x8] sm:$0xff]  ;;  %p1279_p10 = pnand %p1278_p2, %p1272_p9 }
  0x78   : > { %937 = vmatpush3.msra.mxu0 %v354_v14  ;;  %972 = vmatprep.subr.mxu1 %v467_v19  ;;  %v571_v0 = vld [vmem:[#allocation8] sm:$0xff] }
  0x79   : > { %938 = vmatprep.subr.mxu0 %v353_v16  ;;  %973 = vmatpush3.msra.mxu1 %v467_v19  ;;  %v851_v1 = vld [vmem:[%s1627_s4] ss:$0 sm:$0xff] }
  0x7a   : > { %939 = vmatpush3.msra.mxu0 %v353_v16  ;;  %974 = vmatprep.subr.mxu1 %v466_v21  ;;  %v852_v15 = vld [vmem:[%s1629_s6] ss:$0 sm:$0xff] }
  0x7b   : > { %940 = vmatprep.subr.mxu0 %v352_v18  ;;  %975 = vmatpush3.msra.mxu1 %v466_v21 }
  0x7c   : > { %941 = vmatpush3.msra.mxu0 %v352_v18  ;;  %976 = vmatprep.subr.mxu1 %v465_v23 }
  0x7d   : > { %942 = vmatprep.subr.mxu0 %v351_v20  ;;  %977 = vmatpush3.msra.mxu1 %v465_v23 }
  0x7e   : > { %943 = vmatpush3.msra.mxu0 %v351_v20  ;;  %978 = vmatprep.subr.mxu1 %v464_v25 }
  0x7f   : > { %944 = vmatprep.subr.mxu0 %v350_v22  ;;  %979 = vmatpush3.msra.mxu1 %v464_v25 }
  0x80   : > { %945 = vmatpush3.msra.mxu0 %v350_v22  ;;  %980 = vmatprep.subr.mxu1 %v463_v27 }
  0x81   : > { %946 = vmatprep.subr.mxu0 %v349_v24  ;;  %981 = vmatpush3.msra.mxu1 %v463_v27 }
  0x82   : > { %947 = vmatpush3.msra.mxu0 %v349_v24  ;;  %982 = vmatprep.subr.mxu1 %v462_v32 }
  0x83   : > { %948 = vmatprep.subr.mxu0 %v348_v26  ;;  %983 = vmatpush3.msra.mxu1 %v462_v32 }
  0x84   : > { %949 = vmatpush3.msra.mxu0 %v348_v26  ;;  %984 = vmatprep.subr.mxu1 %v461_v33 }
  0x85   : > { %950 = vmatprep.subr.mxu0 %v347_v28  ;;  %985 = vmatpush3.msra.mxu1 %v461_v33 }
  0x86   : > { %951 = vmatpush3.msra.mxu0 %v347_v28  ;;  %986 = vmatprep.subr.mxu1 %v460_v34 }
  0x87   : > { %953 = vmatmul.mubr.f32.vlgmr.msra.gmra.mxu0 %v344_v29  ;;  %987 = vmatpush3.msra.mxu1 %v460_v34 }
  0x88   : > { %955 = vmatprep.mubr.f32.mxu0 %v345_v30  ;;  %988 = vmatprep.subr.mxu1 %v459_v35 }
  0x89   : > { %989 = vmatpush3.msra.mxu1 %v459_v35  ;;  %996 = vmatprep.subr.mxu0 %v586_v36 }
  0x8a   : > { %1034 = vmatprep.subr.mxu1 %v586_v36  ;;  %997 = vmatpush3.msra.mxu0 %v586_v36 }
  0x8b   : > { %956 = vmatmul.mubr.f32.gmra.mxu0 %v346_v31  ;;  %998 = vmatprep.subr.mxu0 %v585_v37 }
  0x8c   : > { %999 = vmatpush3.msra.mxu0 %v585_v37 }
  0x8d   : > { %1000 = vmatprep.subr.mxu0 %v584_v38 }
  0x8e   : > { %1001 = vmatpush3.msra.mxu0 %v584_v38 }
  0x8f   : > { %1002 = vmatprep.subr.mxu0 %v583_v39 }
  0x90   : > { %1003 = vmatpush3.msra.mxu0 %v583_v39 }
  0x91   : > { %1004 = vmatprep.subr.mxu0 %v582_v40 }
  0x92   : > { %1005 = vmatpush3.msra.mxu0 %v582_v40 }
  0x93   : > { %1006 = vmatprep.subr.mxu0 %v581_v41 }
  0x94   : > { %1007 = vmatpush3.msra.mxu0 %v581_v41 }
  0x95   : > { %1008 = vmatprep.subr.mxu0 %v580_v42 }
  0x96   : > { %1009 = vmatpush3.msra.mxu0 %v580_v42 }
  0x97   : > { %1010 = vmatprep.subr.mxu0 %v579_v43 }
  0x98   : > { %1011 = vmatpush3.msra.mxu0 %v579_v43 }
  0x99   : > { %1012 = vmatprep.subr.mxu0 %v578_v44 }
  0x9a   : > { %1013 = vmatpush3.msra.mxu0 %v578_v44 }
  0x9b   : > { %1014 = vmatprep.subr.mxu0 %v577_v45 }
  0x9c   : > { %1015 = vmatpush3.msra.mxu0 %v577_v45 }
  0x9d   : > { %1016 = vmatprep.subr.mxu0 %v576_v46 }
  0x9e   : > { %1017 = vmatpush3.msra.mxu0 %v576_v46 }
  0x9f   : > { %1018 = vmatprep.subr.mxu0 %v575_v47 }
  0xa0   : > { %1019 = vmatpush3.msra.mxu0 %v575_v47 }
  0xa1   : > { %1020 = vmatprep.subr.mxu0 %v574_v61 }
  0xa2   : > { %1021 = vmatpush3.msra.mxu0 %v574_v61 }
  0xa3   : > { %1022 = vmatprep.subr.mxu0 %v573_v62 }
  0xa4   : > { %1023 = vmatpush3.msra.mxu0 %v573_v62 }
  0xa5   : > { %1024 = vmatprep.subr.mxu0 %v572_v63 }
  0xa6   : > { %1025 = vmatpush3.msra.mxu0 %v572_v63 }
  0xa7   : > { %1026 = vmatprep.subr.mxu0 %v571_v0 }
  0xa8   : > { %1027 = vmatpush3.msra.mxu0 %v571_v0 }
 0x147   : > { %v954_v49 = vpop.f32.mrf.mxu0 }
 0x148   : > { %v442_v50 = vadd.f32 %v954_v49, %v850_v48 }
 0x149   : > { %v436_v51 = vpop.f32.mrf.mxu0 }
 0x14a   : > { %v437_v52 = vadd.f32 %v850_v48, %v436_v51  ;;  %v456_v55 = vmax.f32 %v442_v50, 0.0 }
 0x14b   : > { %v957_v53 = vpop.f32.mrf.mxu0 }
 0x14c   : > { %v455_v54 = vmax.f32 %v437_v52, 0.0  ;;  %v452_v56 = vadd.f32 %v957_v53, %v850_v48 }
 0x14d   : > { %v446_v57 = vpop.f32.mrf.mxu0 }
 0x14e   : > { %v447_v58 = vadd.f32 %v850_v48, %v446_v57  ;;  %990 = vmatprep.mubr.f32.mxu1 %v455_v54  ;;  %v458_v60 = vmax.f32 %v452_v56, 0.0 }
 0x14f   : > { %991 = vmatmul.mubr.f32.vlgmr.msra.gmra.mxu1 %v456_v55 }
 0x150   : > { %v457_v59 = vmax.f32 %v447_v58, 0.0  ;;  %1050 = vmatpush3.msra.mxu1 %v586_v36 }
 0x151   : > { %1035 = vmatprep.subr.mxu1 %v585_v37 }
 0x152   : > { %993 = vmatprep.mubr.f32.mxu1 %v457_v59  ;;  %1051 = vmatpush3.msra.mxu1 %v585_v37 }
 0x153   : > { %994 = vmatmul.mubr.f32.gmra.mxu1 %v458_v60  ;;  %1036 = vmatprep.subr.mxu1 %v584_v38 }
 0x154   : > { %1052 = vmatpush3.msra.mxu1 %v584_v38 }
 0x155   : > { %1037 = vmatprep.subr.mxu1 %v583_v39 }
 0x156   : > { %1053 = vmatpush3.msra.mxu1 %v583_v39 }
 0x157   : > { %1038 = vmatprep.subr.mxu1 %v582_v40 }
 0x158   : > { %1054 = vmatpush3.msra.mxu1 %v582_v40 }
 0x159   : > { %1039 = vmatprep.subr.mxu1 %v581_v41 }
 0x15a   : > { %1055 = vmatpush3.msra.mxu1 %v581_v41 }
 0x15b   : > { %1040 = vmatprep.subr.mxu1 %v580_v42 }
 0x15c   : > { %1056 = vmatpush3.msra.mxu1 %v580_v42 }
 0x15d   : > { %1041 = vmatprep.subr.mxu1 %v579_v43 }
 0x15e   : > { %1057 = vmatpush3.msra.mxu1 %v579_v43 }
 0x15f   : > { %1042 = vmatprep.subr.mxu1 %v578_v44 }
 0x160   : > { %1058 = vmatpush3.msra.mxu1 %v578_v44 }
 0x161   : > { %1043 = vmatprep.subr.mxu1 %v577_v45 }
 0x162   : > { %1059 = vmatpush3.msra.mxu1 %v577_v45 }
 0x163   : > { %1044 = vmatprep.subr.mxu1 %v576_v46 }
 0x164   : > { %1060 = vmatpush3.msra.mxu1 %v576_v46 }
 0x165   : > { %1045 = vmatprep.subr.mxu1 %v575_v47 }
 0x166   : > { %1061 = vmatpush3.msra.mxu1 %v575_v47 }
 0x167   : > { %1046 = vmatprep.subr.mxu1 %v574_v61 }
 0x168   : > { %1062 = vmatpush3.msra.mxu1 %v574_v61 }
 0x169   : > { %1047 = vmatprep.subr.mxu1 %v573_v62 }
 0x16a   : > { %1063 = vmatpush3.msra.mxu1 %v573_v62 }
 0x16b   : > { %1048 = vmatprep.subr.mxu1 %v572_v63 }
 0x16c   : > { %1064 = vmatpush3.msra.mxu1 %v572_v63 }
 0x16d   : > { %1049 = vmatprep.subr.mxu1 %v571_v0 }
 0x16e   : > { %1065 = vmatpush3.msra.mxu1 %v571_v0 }
 0x20f   : > { %v992_v2 = vpop.f32.mrf.mxu1 }
 0x210   : > { %v554_v3 = vadd.f32 %v992_v2, %v851_v1 }
 0x211   : > { %v548_v4 = vpop.f32.mrf.mxu1 }
 0x212   : > { %v549_v5 = vadd.f32 %v851_v1, %v548_v4  ;;  %v568_v8 = vmax.f32 %v554_v3, 0.0 }
 0x213   : > { %v995_v6 = vpop.f32.mrf.mxu1 }
 0x214   : > { %v567_v7 = vmax.f32 %v549_v5, 0.0  ;;  %v564_v9 = vadd.f32 %v995_v6, %v851_v1 }
 0x215   : > { %v558_v10 = vpop.f32.mrf.mxu1 }
 0x216   : > { %v559_v11 = vadd.f32 %v851_v1, %v558_v10  ;;  %1028 = vmatprep.mubr.f32.mxu0 %v567_v7  ;;  %v570_v13 = vmax.f32 %v564_v9, 0.0 }
 0x217   : > { %1029 = vmatmul.mubr.f32.vlgmr.msra.gmra.mxu0 %v568_v8 }
 0x218   : > { %v569_v12 = vmax.f32 %v559_v11, 0.0 }
 0x21a   : > { %1031 = vmatprep.mubr.f32.mxu1 %v569_v12 }
 0x21b   : > { %1032 = vmatmul.mubr.f32.vlgmr.msra.gmra.mxu1 %v570_v13 }
 0x2d7   : > { %v1030_v14 = vpop.f32.mrf.mxu0 }
 0x2d8   : > { %v666_v20 = vadd.f32 %v1030_v14, %v852_v15 }
 0x2d9   : > { %v660_v16 = vpop.f32.mrf.mxu0 }
 0x2da   : > { %v661_v17 = vadd.f32 %v852_v15, %v660_v16 }
 0x2db   : > { %v1033_v18 = vpop.f32.mrf.mxu1 }
 0x2dc   : > { %679 = vmax.xlane.f32.xlu0 %v661_v17  ;;  %v676_v22 = vadd.f32 %v1033_v18, %v852_v15 }
 0x2dd   : > { %v670_v19 = vpop.f32.mrf.mxu1 }
 0x2de   : > { %v671_v21 = vadd.f32 %v852_v15, %v670_v19 }
 0x2e0   : > { %683 = vmax.xlane.f32.xlu1 %v671_v21  ;;  %681 = vmax.xlane.f32.xlu0 %v666_v20 }
 0x2e4   : > { %685 = vmax.xlane.f32.xlu1 %v676_v22 }
 0x365   : > { %v680_v23 = vpop.xlane.xlu0 %679 }
 0x366   : > { %v687_v24 = vsub.f32 %v661_v17, %v680_v23 }
 0x368   : > { %v691_v25 = vmul.f32 1.442695, %v687_v24 }
 0x369   : > { %v684_v26 = vpop.xlane.xlu1 %683  ;;  %v682_v27 = vpop.xlane.xlu0 %681 }
 0x36a   : > { %1147 = vpow2.f32 %v691_v25  ;;  %v689_v28 = vsub.f32 %v671_v21, %v684_v26  ;;  %v688_v29 = vsub.f32 %v666_v20, %v682_v27 }
 0x36c   : > { %v695_v30 = vmul.f32 1.442695, %v689_v28  ;;  %v693_v31 = vmul.f32 1.442695, %v688_v29 }
 0x36d   : > { %v686_v32 = vpop.xlane.xlu1 %685 }
 0x36e   : > { %1149 = vpow2.f32 %v695_v30  ;;  %v690_v33 = vsub.f32 %v676_v22, %v686_v32 }
 0x36f   : > { %1151 = vpow2.f32 %v693_v31 }
 0x370   : > { %v697_v34 = vmul.f32 1.442695, %v690_v33 }
 0x372   : > { %1153 = vpow2.f32 %v697_v34 }
 0x377   : > { %v1148_v35 = vpop.eup %1147 }
 0x378   : > { %699 = vadd.xlane.f32.xlu0 %v1148_v35 }
 0x37b   : > { %v1150_v36 = vpop.eup %1149 }
 0x37c   : > { %v1152_v37 = vpop.eup %1151  ;;  %703 = vadd.xlane.f32.xlu0 %v1150_v36 }
 0x37d   : > { %701 = vadd.xlane.f32.xlu1 %v1152_v37 }
 0x37f   : > { %v1154_v38 = vpop.eup %1153 }
 0x381   : > { %705 = vadd.xlane.f32.xlu1 %v1154_v38 }
 0x401   : > { %v700_v39 = vpop.xlane.xlu0 %699 }
 0x402   : > { %1155 = vrcp.f32 %v700_v39 }
 0x405   : > { %v704_v40 = vpop.xlane.xlu0 %703 }
 0x406   : > { %v702_v41 = vpop.xlane.xlu1 %701  ;;  %1157 = vrcp.f32 %v704_v40 }
 0x407   : > { %1159 = vrcp.f32 %v702_v41 }
 0x40a   : > { %v706_v42 = vpop.xlane.xlu1 %705 }
 0x40b   : > { %1161 = vrcp.f32 %v706_v42 }
 0x40f   : > { %v1156_v43 = vpop.eup %1155 }
 0x410   : > { %v711_v44 = vmul.f32 %v1156_v43, %v1148_v35 }
 0x412   : > { %715 = vst [vmem:[%s340_s11] sm:$0xff] %v711_v44 }
 0x413   : > { %v1158_v45 = vpop.eup %1157 }
 0x414   : > { %v1160_v46 = vpop.eup %1159  ;;  %v713_v47 = vmul.f32 %v1158_v45, %v1150_v36 }
 0x415   : > { %v712_v48 = vmul.f32 %v1160_v46, %v1152_v37 }
 0x416   : > { %717 = vst [vmem:[%s340_s11 + $0x10] sm:$0xff] %v713_v47 }
 0x417   : > { %716 = vst [vmem:[%s340_s11 + $0x8] sm:$0xff] %v712_v48 }
 0x418   : > { %v1162_v49 = vpop.eup %1161 }
 0x419   : > { %v714_v50 = vmul.f32 %v1162_v49, %v1154_v38 }
 0x41b   : > { %718 = vst [vmem:[%s340_s11 + $0x18] sm:$0xff] %v714_v50 }
 0x41c   : > { %1282 = shalt.err (!%p1279_p10)
}
 0x41d   : > { %s1283_s10 = scalar_lea.hbm %s1578_s16, 512  ;;  %s1287_s29 = scalar_lea.hbm %s1630_s7, 1024 }
 0x41e   : > { %p1284_p6 = scmp.ne.s32.totalorder %s1578_s16, %s1283_s10  ;;  %p1288_p3 = scmp.lt.s32.totalorder %s1578_s16, %s1630_s7 }
 0x41f   : > { %p1289_p11 = scmp.lt.s32.totalorder %s1287_s29, %s1283_s10 }
 0x420   : > { %p1285_p4 = pnand %p1284_p6, %p1653_p1 }
 0x421   : > { %p1290_p5 = por %p1289_p11, %p1288_p3 }
 0x422   : > { %p1286_p8 = pneg %p1285_p4 }
 0x424   : > { %p1291_p7 = pnand %p1290_p5, %p1286_p8 }
 0x426   : > { %1294 = shalt.err (!%p1291_p7)
}
 0x427   : > { %s1350_s18 = smov 128   ;;  %s1351_s23 = smov 8  }
 0x428   : > { %1080 = dma.vmem_to_hbm [thread:$0]  (%p1653_p1), %s1580_s22, 512, %s1578_s16, %s720_s1, %s1350_s18, %s1350_s18, %s1351_s23  }
 0x429 PF: > { %s748_s12 = sand.u32 1, %s1329_s24   ;;  %p1654_p12 = scmp.ne.s32.totalorder %s1639_s8, 0 }
 0x42a   : > { %p1655_p9 = scmp.ge.s32.totalorder %s1341_s27, 2  ;;  %s749_s28 = scalar_lea.sflag [#allocation4], %s748_s12 }
 0x42c   : > { %p1097_p13 = pnand %p1655_p9, %p1654_p12 }
 0x42e   : > { %p1098_p0 = pneg %p1097_p13 }
 0x430   : > { %1324 = dma.done.wait (%p1098_p0), %s749_s28, 512  }
 0x431   : > { %1326 = vsyncadd (%p1098_p0), %s749_s28, 4294966784  ;;  %p22_p2 = scmp.ge.s32.totalorder %s1481_s14, 4   ;;  %s1656_s24 = smov %s1333_s25 }
 0x432   : > { %s1657_s25 = smov %s1337_s26  ;;  %s1658_s26 = smov %s1491_s17 }
 0x433   : > { %s1659_s27 = smov %s1481_s14  ;;  %24 = sbr.rel (!%p22_p2) target bundleno = 9 (0x9), region = 105 }
 0x438   :  { %754 = vsyncpa [#allocation3], 1 }
 0x439   :  { %756 = vsyncpa [#allocation3 + $0x1], 1 }
 0x43a   :  { %757 = vsyncpa [#allocation6], 1 }
 0x43b   :  { %758 = vsyncpa [#allocation9], 1 }
 0x43c   :  { %759 = vsyncpa [#allocation4], 1 }
 0x43d   :  { %761 = vsyncpa [#allocation4 + $0x1], 1 }

</bundles_post_ra>
